<compile_context>
chip_gen: v7x
topology: tpu7x:2x2x1
jax: 0.10.0
libtpu: 0.0.40
codegen_flags: <defaults>
</compile_context>

<pallas_src>
import jax
import jax.numpy as jnp
from jax import lax
from jax.experimental import pallas as pl
from jax.experimental.pallas import tpu as pltpu


def policy_mlp_high_kernel(x_ref, w1_ref, b1_ref, w2_ref, b2_ref, o_ref):
    # x: [TB, D], w1: [H, D] (PyTorch [out,in]), b1: [1, H],
    # w2: [R, H] (PyTorch [out,in]), b2: [1, R], o: [TB, 1, R]
    x = x_ref[...]

    # Linear1 + ReLU: x @ w1.T via dot_general (contract dim 1 of both operands);
    # no transposed weight copy is ever materialized.
    h = lax.dot_general(
        x, w1_ref[...],
        dimension_numbers=(((1,), (1,)), ((), ())),
        preferred_element_type=jnp.float32,
    ) + b1_ref[...]
    h = jnp.maximum(h, 0.0)

    # Linear2: h @ w2.T
    out = lax.dot_general(
        h, w2_ref[...],
        dimension_numbers=(((1,), (1,)), ((), ())),
        preferred_element_type=jnp.float32,
    ) + b2_ref[...]

    # Write the unsqueezed [TB, 1, R] output directly (PyTorch .unsqueeze(1)).
    o_ref[:, 0, :] = out.astype(o_ref.dtype)


def _cost_estimate(B, D, H, R, bytes_per_elt):
    flops = 2 * B * (D * H + H * R)
    bytes_accessed = bytes_per_elt * (B * D + H * D + H + R * H + R + B * R)
    return pl.CostEstimate(flops=flops, transcendentals=0,
                           bytes_accessed=bytes_accessed)


def policy_mlp_high(state_query, w1, b1, w2, b2, *, batch_tile=None):
    """state_query: [B, D]; w1: [H, D]; b1: [H]; w2: [R, H]; b2: [R] (PyTorch layouts).
    Returns [B, 1, R] (== PyTorch .unsqueeze(1)). Dropout = identity (eval mode)."""
    B, D = state_query.shape
    H = w1.shape[0]
    R = w2.shape[0]
    dtype = state_query.dtype

    # Biases as [1, out] rows (free metadata reshape); weights are NOT transposed.
    b1_2d = b1.reshape(1, H)
    b2_2d = b2.reshape(1, R)

    out_shape = jax.ShapeDtypeStruct((B, 1, R), dtype)
    cost = _cost_estimate(B, D, H, R, jnp.dtype(dtype).itemsize)

    if batch_tile is None or batch_tile >= B:
        # Small-batch path: everything trivially fits in VMEM; run the kernel once
        # with no grid (no pipeline machinery, no double buffering).
        vmem = pltpu.MemorySpace.VMEM
        return pl.pallas_call(
            policy_mlp_high_kernel,
            out_shape=out_shape,
            in_specs=[pl.BlockSpec(memory_space=vmem)] * 5,
            out_specs=pl.BlockSpec(memory_space=vmem),
            cost_estimate=cost,
        )(state_query, w1, b1_2d, w2, b2_2d)

    # Large-batch path: tile the batch. Weights/biases use constant index_maps so
    # they stay VMEM-resident across all batch tiles (no re-DMA); the batch axis is
    # "parallel" so v7x can shard grid steps across its two TensorCores.
    TB = batch_tile
    assert B % TB == 0, "batch_tile must divide B for this simple path"
    return pl.pallas_call(
        policy_mlp_high_kernel,
        out_shape=out_shape,
        grid_spec=pltpu.PrefetchScalarGridSpec(
            num_scalar_prefetch=0,
            grid=(B // TB,),
            in_specs=[
                pl.BlockSpec((TB, D), lambda i: (i, 0)),   # x: blocked on batch
                pl.BlockSpec((H, D), lambda i: (0, 0)),    # w1: pinned
                pl.BlockSpec((1, H), lambda i: (0, 0)),    # b1: pinned
                pl.BlockSpec((R, H), lambda i: (0, 0)),    # w2: pinned
                pl.BlockSpec((1, R), lambda i: (0, 0)),    # b2: pinned
            ],
            out_specs=pl.BlockSpec((TB, 1, R), lambda i: (i, 0, 0)),
        ),
        compiler_params=pltpu.CompilerParams(
            dimension_semantics=("parallel",),
        ),
        cost_estimate=cost,
    )(state_query, w1, b1_2d, w2, b2_2d)


def _ref_forward(state_query, w1, b1, w2, b2):
    h = jnp.maximum(state_query @ w1.T + b1, 0.0)
    return (h @ w2.T + b2)[:, None, :]


if __name__ == "__main__":
    # Small shapes consistent with the module's config.
    B = 8                      # batch
    mlp_input_dim_high = 32    # config['mlp_input_dim_high']
    mlp_hidden_dim = 64        # config['mlp_hidden_dim']
    rel_dim = 16               # config['rel_dim']

    key = jax.random.PRNGKey(0)
    k_x, k_w1, k_b1, k_w2, k_b2, k_xb = jax.random.split(key, 6)

    state_query = jax.random.normal(k_x, (B, mlp_input_dim_high), dtype=jnp.float32)

    # Deterministic parameter init (PyTorch Linear convention: W [out, in], b [out]).
    bound1 = 1.0 / (mlp_input_dim_high ** 0.5)
    w1 = jax.random.uniform(k_w1, (mlp_hidden_dim, mlp_input_dim_high),
                            minval=-bound1, maxval=bound1, dtype=jnp.float32)
    b1 = jax.random.uniform(k_b1, (mlp_hidden_dim,),
                            minval=-bound1, maxval=bound1, dtype=jnp.float32)

    bound2 = 1.0 / (mlp_hidden_dim ** 0.5)
    w2 = jax.random.uniform(k_w2, (rel_dim, mlp_hidden_dim),
                            minval=-bound2, maxval=bound2, dtype=jnp.float32)
    b2 = jax.random.uniform(k_b2, (rel_dim,),
                            minval=-bound2, maxval=bound2, dtype=jnp.float32)

    # 1) Small-batch (gridless) path — the module's native regime.
    out = jax.block_until_ready(policy_mlp_high(state_query, w1, b1, w2, b2))
    ref = _ref_forward(state_query, w1, b1, w2, b2)
    assert out.shape == (B, 1, rel_dim), out.shape
    assert jnp.allclose(out, ref, atol=1e-5, rtol=1e-5), "small-batch mismatch"

    # 2) Batch-tiled path (weights pinned, parallel batch axis) — functional check.
    B_big, TB = 256, 64
    xb = jax.random.normal(k_xb, (B_big, mlp_input_dim_high), dtype=jnp.float32)
    out_b = jax.block_until_ready(
        policy_mlp_high(xb, w1, b1, w2, b2, batch_tile=TB))
    ref_b = _ref_forward(xb, w1, b1, w2, b2)
    assert out_b.shape == (B_big, 1, rel_dim), out_b.shape
    assert jnp.allclose(out_b, ref_b, atol=1e-5, rtol=1e-5), "tiled-batch mismatch"

    print("KERNEL_OK")
</pallas_src>

<mosaic_0001>
module attributes {stable_mosaic.version = 11 : i64} {
  func.func @policy_mlp_high_kernel(%arg0: memref<8x32xf32, #tpu.memory_space<vmem>>, %arg1: memref<64x32xf32, #tpu.memory_space<vmem>>, %arg2: memref<1x64xf32, #tpu.memory_space<vmem>>, %arg3: memref<16x64xf32, #tpu.memory_space<vmem>>, %arg4: memref<1x16xf32, #tpu.memory_space<vmem>>, %arg5: memref<8x1x16xf32, #tpu.memory_space<vmem>>) attributes {dimension_semantics = [], scalar_prefetch = 0 : i64, scratch_operands = 0 : i64, tpu.core_type = #tpu.core_type<tc>} {
    %c0 = arith.constant 0 : index
    %c0_0 = arith.constant 0 : index
    %0 = vector.load %arg0[%c0, %c0_0] : memref<8x32xf32, #tpu.memory_space<vmem>>, vector<8x32xf32>
    %c0_1 = arith.constant 0 : index
    %c0_2 = arith.constant 0 : index
    %1 = vector.load %arg1[%c0_1, %c0_2] : memref<64x32xf32, #tpu.memory_space<vmem>>, vector<64x32xf32>
    %cst = arith.constant dense<0.000000e+00> : vector<8x64xf32>
    %2 = tpu.matmul %0, %1, %cst {dimension_numbers = #tpu.dot_dimension_numbers<[1], [1], [0], [0], [0, 0, 1, 0], [], []>} : vector<8x32xf32>, vector<64x32xf32>, vector<8x64xf32> -> vector<8x64xf32>
    %c0_3 = arith.constant 0 : index
    %c0_4 = arith.constant 0 : index
    %3 = vector.load %arg2[%c0_3, %c0_4] : memref<1x64xf32, #tpu.memory_space<vmem>>, vector<1x64xf32>
    %4 = vector.broadcast %3 : vector<1x64xf32> to vector<8x64xf32>
    %5 = arith.addf %2, %4 : vector<8x64xf32>
    %cst_5 = arith.constant 0.000000e+00 : f32
    %6 = vector.broadcast %cst_5 : f32 to vector<8x64xf32>
    %7 = arith.maximumf %5, %6 : vector<8x64xf32>
    %c0_6 = arith.constant 0 : index
    %c0_7 = arith.constant 0 : index
    %8 = vector.load %arg3[%c0_6, %c0_7] : memref<16x64xf32, #tpu.memory_space<vmem>>, vector<16x64xf32>
    %cst_8 = arith.constant dense<0.000000e+00> : vector<8x16xf32>
    %9 = tpu.matmul %7, %8, %cst_8 {dimension_numbers = #tpu.dot_dimension_numbers<[1], [1], [0], [0], [0, 0, 1, 0], [], []>} : vector<8x64xf32>, vector<16x64xf32>, vector<8x16xf32> -> vector<8x16xf32>
    %c0_9 = arith.constant 0 : index
    %c0_10 = arith.constant 0 : index
    %10 = vector.load %arg4[%c0_9, %c0_10] : memref<1x16xf32, #tpu.memory_space<vmem>>, vector<1x16xf32>
    %11 = vector.broadcast %10 : vector<1x16xf32> to vector<8x16xf32>
    %12 = arith.addf %9, %11 : vector<8x16xf32>
    %c0_11 = arith.constant 0 : index
    %c0_12 = arith.constant 0 : index
    %c0_13 = arith.constant 0 : index
    %13 = vector.load %arg5[%c0_11, %c0_12, %c0_13] : memref<8x1x16xf32, #tpu.memory_space<vmem>>, vector<8x1x16xf32>
    %14 = vector.shape_cast %13 : vector<8x1x16xf32> to vector<8x16xf32>
    %15 = vector.shape_cast %12 : vector<8x16xf32> to vector<8x1x16xf32>
    tpu.vector_store %arg5[%c0_11, %c0_12, %c0_13], %15 {strides = array<i32>} : memref<8x1x16xf32, #tpu.memory_space<vmem>>, vector<8x1x16xf32>,
    return
  }
}

</mosaic_0001>

<bundles_post_ra>
// kernel: tpu_custom_call.1
= control target key start
LH: loop header
LB: loop body
LE: loop exit
PB: predicated region body
PF: predicated region fallthrough
CT: control target
= control target key end

     0   :  { %vm37_vm0 = vcmask 261120   ;;  %v411_v2 = vmov 0.0|0.0   ;;  %vm145_vm2 = vcmask 523264   ;;  %vm412_vm3 = vmmov 0   ;;  %s525_s0 = inlined_call_operand.vmem [shape: f32[8,32], index: 0, kind: input, shape index: {}]   ;;  %s526_s1 = inlined_call_operand.vmem [shape: f32[64,32], index: 1, kind: input, shape index: {}]   ;;  %s527_s2 = inlined_call_operand.vmem [shape: f32[1,64], index: 2, kind: input, shape index: {}]   ;;  %s528_s3 = inlined_call_operand.vmem [shape: f32[16,64], index: 3, kind: input, shape index: {}]   ;;  %s529_s4 = inlined_call_operand.vmem [shape: f32[1,16], index: 4, kind: input, shape index: {}]   ;;  %s530_s5 = inlined_call_operand.hbm [shape: f32[8,1,16], index: 5, kind: output, shape index: {}]  }
   0x1   :  { %v22_v0 = vld [vmem:[%s526_s1] sm:$0xff]  ;;  %v23_v1 = vld [vmem:[%s526_s1 + $0x8] sm:$0xff]  ;;  %360 = vmatprep.subr.bf16.mxu0 %v411_v2  ;;  %vm456_vm1 = vmpackc.low %vm37_vm0, %vm37_vm0  ;;  %376 = vmatprep.subr.bf16.mxu1 %v411_v2  ;;  %v413_v5 = vmov 0.0  }
   0x2   :  { %v361_v3 = vpack.c.bf16 %v23_v1, %v22_v0  ;;  %350 = vmatprep.mubr.msk.f32.mxu0 %vm412_vm3, %v413_v5  ;;  %357 = vmatprep.mubr.msk.f32.mxu1 %vm412_vm3, %v413_v5  ;;  %v136_v6 = vld [vmem:[%s528_s3] sm:$0xff]  ;;  %v137_v7 = vld [vmem:[%s528_s3 + $0x8] sm:$0xff]  ;;  %v24_v8 = vld [vmem:[%s526_s1 + $0x10] sm:$0xff] }
   0x3   :  { %v25_v9 = vld [vmem:[%s526_s1 + $0x18] sm:$0xff]  ;;  %v377_v10 = vpack.c.bf16 %v137_v7, %v136_v6  ;;  %vm378_vm4 = vmpackc.low %vm145_vm2, %vm145_vm2 }
   0x4   :  { %363 = vmatpush3.bf16.xpose.msk.msra.mxu0 %vm456_vm1, %v361_v3 }
   0x5   :  { %364 = vmatprep.subr.bf16.mxu0 %v411_v2 }
   0x6   :  { %10 = vsyncpa [#allocation3], 0  ;;  %379 = vmatpush3.bf16.xpose.msk.msra.mxu1 %vm378_vm4, %v377_v10  ;;  %v365_v11 = vpack.c.bf16 %v25_v9, %v24_v8  ;;  %v26_v12 = vld [vmem:[%s526_s1 + $0x20] sm:$0xff]  ;;  %v27_v13 = vld [vmem:[%s526_s1 + $0x28] sm:$0xff]  ;;  %v414_v24 = vmov 1966171168   ;;  %v230_v26 = vlaneseq }
   0x7   :  { %v369_v14 = vpack.c.bf16 %v27_v13, %v26_v12  ;;  %v28_v15 = vld [vmem:[%s526_s1 + $0x30] sm:$0xff]  ;;  %v29_v16 = vld [vmem:[%s526_s1 + $0x38] sm:$0xff]  ;;  %v21_v18 = vld [vmem:[%s525_s0] sm:$0xff]  ;;  %v228_v25 = vunpack.c.l.s4 %v414_v24  ;;  %vm283_vm5 = vcmask 122880   ;;  %s415_s0 = smov [#allocation2]  }
   0x8   :  { %v373_v17 = vpack.c.bf16 %v29_v16, %v28_v15  ;;  %v308_v19 = vld [vmem:[%s527_s2] ss:$0 sm:$0xff]  ;;  %v231_v28 = vshrl.u32 %v230_v26, 7  ;;  %s297_s2 = sshll.u32 %s415_s0, 4  ;;  %s298_s2 = int_to_ptr.vmem [resolvable:$true] %s297_s2 }
   0x9   :  { %v229_v27 = vunpack.c.0.s8 %v228_v25  ;;  %v318_v29 = vld [vmem:[%s529_s4] ss:$0 sm:$0xff]  ;;  %s387_s4 = scalar_lea.vmem %s298_s2, 128  ;;  %p392_p1 = scmp.lt.s32.totalorder %s298_s2, %s298_s2 }
   0xa   :  { %p388_p0 = scmp.ne.s32.totalorder %s298_s2, %s387_s4  ;;  %p393_p2 = scmp.lt.s32.totalorder %s387_s4, %s387_s4 }
   0xb   :  { %v232_v30 = vsub.s32 %v229_v27, %v231_v28 }
   0xc   :  { %367 = vmatpush3.bf16.xpose.msk.msra.mxu0 %vm456_vm1, %v365_v11  ;;  %p394_p3 = por %p393_p2, %p392_p1 }
   0xd   :  { %368 = vmatprep.subr.bf16.mxu0 %v411_v2 }
   0xe   :  { %p395_p4 = pnand %p394_p3, %p388_p0 }
  0x14   :  { %371 = vmatpush3.bf16.xpose.msk.msra.mxu0 %vm456_vm1, %v369_v14 }
  0x15   :  { %372 = vmatprep.subr.bf16.mxu0 %v411_v2 }
  0x1c   :  { %375 = vmatpush3.bf16.xpose.msk.msra.mxu0 %vm456_vm1, %v373_v17 }
  0x23   :  { %351 = vmatmul.mubr.msk.f32.vlgmr.msra.gmra.mrb[0].mxu0 %vm37_vm0, %v21_v18 }
  0xf6   :  { %v131_v20 = vpop.f32.mrb[0].mxu0 }
  0xf7   :  { %v132_v21 = vadd.f32 %v308_v19, %v131_v20  ;;  %v352_v22 = vpop.f32.mrb[1].mxu0 }
  0xf9   :  { %v135_v23 = vmax.f32 %v132_v21, 0.0 }
  0xfb   :  { %358 = vmatmul.mubr.msk.f32.vlgmr.msra.gmra.mrb[0].mxu1 %vm145_vm2, %v135_v23 }
 0x1ce   :  { %v221_v31 = vpop.f32.mrb[0].mxu1 }
 0x1cf   :  { %v222_v32 = vadd.f32 %v318_v29, %v221_v31  ;;  %v359_v33 = vpop.f32.mrb[1].mxu1 }
 0x1d1   :  { %v226_v34 = vcombine.high %v222_v32, %v222_v32  ;;  %v233_v35 = vrot.slane %v222_v32, %v232_v30 }
 0x1d3   :  { %v240_v36 = vrot.slane %v226_v34, %v232_v30  ;;  %v241_v37 = vcombine.high %v233_v35, %v233_v35  ;;  %v249_v38 = vrot.slane %v233_v35, %v232_v30 }
 0x1d5   :  { %v242_v39 = vcombine.high %v240_v36, %v240_v36  ;;  %v256_v40 = vrot.slane %v240_v36, %v232_v30  ;;  %v263_v41 = vrot.slane %v241_v37, %v232_v30  ;;  %v271_v42 = vcombine.high %v249_v38, %v249_v38  ;;  %284 = vst.msk [vmem:[#allocation2] sm:$0x1] %vm283_vm5, %v249_v38 }
 0x1d7   :  { %v270_v43 = vrot.slane %v242_v39, %v232_v30  ;;  %v272_v44 = vcombine.high %v256_v40, %v256_v40  ;;  %v273_v45 = vcombine.high %v263_v41, %v263_v41  ;;  %285 = vst.msk [vmem:[#allocation2 + $0x1] sm:$0x1] %vm283_vm5, %v263_v41  ;;  %286 = vst.msk [vmem:[#allocation2 + $0x2] sm:$0x1] %vm283_vm5, %v271_v42 }
 0x1d8   :  { %288 = vst.msk [vmem:[#allocation2 + $0x4] sm:$0x1] %vm283_vm5, %v256_v40 }
 0x1d9   :  { %v274_v46 = vcombine.high %v270_v43, %v270_v43  ;;  %287 = vst.msk [vmem:[#allocation2 + $0x3] sm:$0x1] %vm283_vm5, %v273_v45  ;;  %289 = vst.msk [vmem:[#allocation2 + $0x5] sm:$0x1] %vm283_vm5, %v270_v43 }
 0x1da   :  { %290 = vst.msk [vmem:[#allocation2 + $0x6] sm:$0x1] %vm283_vm5, %v272_v44 }
 0x1db   :  { %291 = vst.msk [vmem:[#allocation2 + $0x7] sm:$0x1] %vm283_vm5, %v274_v46 }
 0x1dc   :  { %398 = shalt.err (!%p395_p4)
}
 0x1dd   :  { %s399_s19 = scalar_lea.hbm %s530_s5, 128 }
 0x1de   :  { %p400_p5 = scmp.ne.s32.totalorder %s530_s5, %s399_s19  ;;  %p403_p6 = scmp.lt.u32.totalorder %s399_s19, %s530_s5 }
 0x1e0   :  { %p405_p7 = pnand %p403_p6, %p400_p5 }
 0x1e2   :  { %408 = shalt.err (!%p405_p7)
}
 0x1e3   :  { %s416_s24 = smov 16   ;;  %s417_s25 = smov 1  }
 0x1e4   :  { %303 = dma.vmem_to_hbm [thread:$0]  %s298_s2, 128, %s530_s5, [#allocation3], %s416_s24, %s416_s24, %s417_s25  }
 0x1e5   :  { %409 = dma.done.wait [#allocation3], 128  }
 0x1e6   :  { %410 = vsyncadd [#allocation3], 4294967168 }
 0x1e7   :  { %307 = vsyncpa [#allocation3], 1 }

</bundles_post_ra>
